<compile_context>
chip_gen: v6e
topology: v6e:2x2x1
jax: 0.10.0
libtpu: 0.0.40
codegen_flags: <defaults>
</compile_context>

<pallas_src>
import jax
import jax.numpy as jnp
from jax.experimental import pallas as pl
from jax.experimental.pallas import tpu as pltpu


def _identity_copy_kernel(x_ref, y_ref):
    """Lane-dense VMEM tile copy: y = x (the identity flow moves no info)."""
    y_ref[...] = x_ref[...]


def _vmem_budget():
    """Return (per-buffer tile byte target, vmem_limit_bytes) per chip gen."""
    try:
        vmem = pltpu.get_tpu_info().vmem_capacity_bytes
    except Exception:
        vmem = None
    if vmem is not None and vmem <= 64 * 1024 * 1024:
        # v7x-class: 64 MiB physical VMEM, 32 MiB scoped default.
        # 6 MiB/buffer -> double-buffered in+out ~= 24 MiB, inside the limit.
        return 6 * 1024 * 1024, 32 * 1024 * 1024
    if vmem is None:
        # Unknown chip: conservative numbers that fit every generation.
        return 4 * 1024 * 1024, 32 * 1024 * 1024
    # v5e / v6e: 128 MiB physical VMEM.  Larger tiles amortize the
    # ~0.35 us per-grid-step overhead; explicit 64 MiB scoped limit.
    return 8 * 1024 * 1024, 64 * 1024 * 1024


def _choose_2d_layout(total: int):
    """Lane-dense (rows, lanes, tail_pad) factorization of `total` elements.

    Never returns a single-row (1, total) layout: if `total` has no
    multiple-of-128 factor we pad the flat tail up to a lane-dense width
    instead (review fix -- a (1, total) block double-buffers ~4x the whole
    array in VMEM and wastes 7/8 sublanes).
    """
    for n in (4096, 2048, 1024, 512, 256, 128):
        if total % n == 0:
            return total // n, n, 0
    n = 512
    padded = ((total + n - 1) // n) * n
    return padded // n, n, padded - total


def _identity_copy(x: jax.Array) -> jax.Array:
    """Materialized identity y = x as a tiled, lane-dense Pallas streaming copy."""
    orig_shape = x.shape
    total = x.size
    m, n, pad = _choose_2d_layout(total)

    flat = x.reshape(total)
    if pad:
        flat = jnp.pad(flat, (0, pad))
    x2d = flat.reshape(m, n)

    itemsize = jnp.dtype(x.dtype).itemsize
    # dtype-aware sublane granule: f32 -> 8, bf16 -> 16, int8/fp8 -> 32 rows.
    sub = max(8, 32 // max(itemsize, 1))

    tile_target, vmem_limit = _vmem_budget()
    bytes_per_row = max(n * itemsize, 1)
    tm = max(1, min(m, tile_target // bytes_per_row))
    if tm < m:
        # Sub-block: keep (sublane, 128) divisibility for the chosen dtype.
        tm = max(sub, (tm // sub) * sub)
        tm = min(tm, m)
    # v7x has 2 TensorCores: make sure a "parallel" grid has >= 2 row-tiles
    # whenever the slab is large enough to split cleanly.
    if tm == m and m >= 2 * sub:
        tm = max(sub, ((m // 2) // sub) * sub)

    grid = (pl.cdiv(m, tm),)

    y2d = pl.pallas_call(
        _identity_copy_kernel,
        out_shape=jax.ShapeDtypeStruct((m, n), x.dtype),
        grid_spec=pltpu.PrefetchScalarGridSpec(
            num_scalar_prefetch=0,
            grid=grid,
            in_specs=[pl.BlockSpec((tm, n), lambda i: (i, 0))],
            out_specs=pl.BlockSpec((tm, n), lambda i: (i, 0)),
        ),
        compiler_params=pltpu.CompilerParams(
            # No resident output block -> safe to shard across both TCs (v7x).
            dimension_semantics=("parallel",),
            vmem_limit_bytes=vmem_limit,
        ),
        # NOTE: if the caller can donate x, adding input_output_aliases={0: 0}
        # here removes the second HBM allocation (traffic unchanged).  Left
        # off so callers may keep x live after the call.
    )(x2d)

    out = y2d.reshape(-1)
    if pad:
        out = out[:total]
    return out.reshape(orig_shape)


def flow_module_base_forward(x: jax.Array, *, materialize_output: bool = False):
    """Forward pass of FlowModuleBase (identity flow).

    Args:
      x: (B, C, H, W) array, NCHW layout (same convention as the PyTorch
         module).
      materialize_output: if True, produce y in a fresh HBM buffer via the
         Pallas streaming-copy kernel.  Default False returns x zero-copy
         (JAX arrays are immutable, so this is semantically identical and
         avoids the whole HBM round trip -- the top perf-review item).
    Returns:
      (y, logdet) with y.shape == x.shape and logdet.shape == (B,).
    """
    y = _identity_copy(x) if materialize_output else x
    # log|det J| of the identity map is exactly 0 for every batch element;
    # no kernel work is needed for it (computed in the wrapper).
    logdet = jnp.zeros((x.shape[0],), dtype=jnp.float32)
    return y, logdet


def flow_module_base_inverse(y: jax.Array) -> jax.Array:
    """Inverse of the identity flow: x = y (no kernel, no HBM round trip)."""
    return y


if __name__ == "__main__":
    key = jax.random.PRNGKey(0)
    # Small NCHW input consistent with a Glow-style flow module.
    x = jax.random.normal(key, (2, 4, 16, 16), dtype=jnp.float32)

    # Default path: zero-copy identity forward (no kernel launched).
    y, logdet = flow_module_base_forward(x)
    jax.block_until_ready((y, logdet))
    assert y.shape == x.shape and y.dtype == x.dtype
    assert logdet.shape == (x.shape[0],)
    assert bool(jnp.allclose(y, x))
    assert bool(jnp.allclose(logdet, jnp.zeros_like(logdet)))

    # Materialized path: exercises the Pallas streaming-copy kernel once.
    y_mat, logdet_mat = flow_module_base_forward(x, materialize_output=True)
    jax.block_until_ready((y_mat, logdet_mat))
    assert y_mat.shape == x.shape and y_mat.dtype == x.dtype
    assert bool(jnp.allclose(y_mat, x))
    assert bool(jnp.allclose(logdet_mat, jnp.zeros_like(logdet_mat)))

    # Non-128-divisible element count -> exercises the hardened padded
    # lane-dense fallback layout (never a (1, total) single block).
    x_odd = jax.random.normal(jax.random.PRNGKey(1), (2, 3, 7, 5),
                              dtype=jnp.float32)
    y_odd = _identity_copy(x_odd)
    jax.block_until_ready(y_odd)
    assert y_odd.shape == x_odd.shape
    assert bool(jnp.allclose(y_odd, x_odd))

    # Inverse of the identity flow returns its input.
    x_rec = flow_module_base_inverse(y_mat)
    jax.block_until_ready(x_rec)
    assert bool(jnp.allclose(x_rec, x))

    print("KERNEL_OK")
</pallas_src>

<mosaic_0001>
module attributes {stable_mosaic.version = 11 : i64} {
  func.func @_identity_copy_kernel(%arg0: i32, %arg1: memref<1x2048xf32, #tpu.memory_space<vmem>>, %arg2: memref<1x2048xf32, #tpu.memory_space<vmem>>) attributes {dimension_semantics = [#tpu.dimension_semantics<parallel>], iteration_bounds = array<i64: 1>, scalar_prefetch = 0 : i64, scratch_operands = 0 : i64, tpu.core_type = #tpu.core_type<tc>, window_params = [{transform_indices = @transform_0, window_bounds = array<i64: 1, 2048>}, {transform_indices = @transform_1, window_bounds = array<i64: 1, 2048>}]} {
    %c0 = arith.constant 0 : index
    %c0_0 = arith.constant 0 : index
    %0 = vector.load %arg1[%c0, %c0_0] : memref<1x2048xf32, #tpu.memory_space<vmem>>, vector<1x2048xf32>
    %c0_1 = arith.constant 0 : index
    %c0_2 = arith.constant 0 : index
    %1 = vector.load %arg2[%c0_1, %c0_2] : memref<1x2048xf32, #tpu.memory_space<vmem>>, vector<1x2048xf32>
    tpu.vector_store %arg2[%c0_1, %c0_2], %0 {strides = array<i32>} : memref<1x2048xf32, #tpu.memory_space<vmem>>, vector<1x2048xf32>,
    return
  }
  func.func @transform_0(%arg0: i32) -> (i32, i32) {
    %c0_i32 = arith.constant 0 : i32
    %c0_i32_0 = arith.constant 0 : i32
    return %arg0, %c0_i32 : i32, i32
  }
  func.func @transform_1(%arg0: i32) -> (i32, i32) {
    %c0_i32 = arith.constant 0 : i32
    %c0_i32_0 = arith.constant 0 : i32
    return %arg0, %c0_i32 : i32, i32
  }
}

</mosaic_0001>

<bundles_post_ra>
// kernel: tpu_custom_call.1
= control target key start
LH: loop header
LB: loop body
LE: loop exit
PB: predicated region body
PF: predicated region fallthrough
CT: control target
= control target key end

     0   :  { %6 = vsyncpa [#allocation3], 0  ;;  %s104_s0 = inlined_call_operand.hbm [shape: f32[1,2048], index: 0, kind: input, shape index: {}]   ;;  %s105_s1 = inlined_call_operand.hbm [shape: f32[1,2048], index: 1, kind: output, shape index: {}]  }
   0x1   :  { %7 = vsyncpa [#allocation4], 0  ;;  %s86_s6 = smov [#allocation2]  }
   0x2   :  { %s14_s7 = sshll.u32 %s86_s6, 4  ;;  %s15_s7 = int_to_ptr.vmem [resolvable:$true] %s14_s7 }
   0x3   :  { %s50_s8 = scalar_lea.vmem %s15_s7, 256  ;;  %p55_p1 = scmp.lt.s32.totalorder %s15_s7, %s15_s7 }
   0x4   :  { %p51_p0 = scmp.ne.s32.totalorder %s15_s7, %s50_s8  ;;  %p56_p2 = scmp.lt.s32.totalorder %s50_s8, %s50_s8 }
   0x6   :  { %p57_p3 = por %p56_p2, %p55_p1 }
   0x8   :  { %p58_p4 = pnand %p57_p3, %p51_p0 }
   0xa   :  { %61 = shalt.err (!%p58_p4)
}
   0xb   :  { %17 = dma.hbm_to_vmem [thread:$0]  %s104_s0, 256, %s15_s7, [#allocation3]  }
   0xc   :  { %82 = dma.done.wait [#allocation3], 256  }
   0xd   :  { %83 = vsyncadd [#allocation3], 4294967040  ;;  %s87_s11 = smov [#allocation5]   ;;  %v21_v0 = vld [vmem:[#allocation2] sm:$0xff]  ;;  %v22_v1 = vld [vmem:[#allocation2 + $0x8] sm:$0xff] }
   0xe   :  { %s31_s12 = sshll.u32 %s87_s11, 4  ;;  %23 = vst [vmem:[#allocation5] sm:$0xff] %v21_v0  ;;  %24 = vst [vmem:[#allocation5 + $0x8] sm:$0xff] %v22_v1  ;;  %s32_s12 = int_to_ptr.vmem [resolvable:$true] %s31_s12 }
   0xf   :  { %s62_s13 = scalar_lea.vmem %s32_s12, 256  ;;  %p67_p6 = scmp.lt.s32.totalorder %s32_s12, %s32_s12 }
  0x10   :  { %p63_p5 = scmp.ne.s32.totalorder %s32_s12, %s62_s13  ;;  %p68_p7 = scmp.lt.s32.totalorder %s62_s13, %s62_s13 }
  0x12   :  { %p69_p8 = por %p68_p7, %p67_p6 }
  0x14   :  { %p70_p9 = pnand %p69_p8, %p63_p5 }
  0x16   :  { %73 = shalt.err (!%p70_p9)
}
  0x17   :  { %34 = dma.vmem_to_hbm [thread:$0]  %s32_s12, 256, %s105_s1, [#allocation4]  }
  0x18   :  { %84 = dma.done.wait [#allocation4], 256  }
  0x19   :  { %85 = vsyncadd [#allocation4], 4294967040 }
  0x1a   :  { %38 = vsyncpa [#allocation3], 1 }
  0x1b   :  { %39 = vsyncpa [#allocation4], 1 }

</bundles_post_ra>
